<compile_context>
chip_gen: v7x
topology: tpu7x:2x2x1
jax: 0.10.0
libtpu: 0.0.40
codegen_flags: <defaults>
</compile_context>

<pallas_src>
import numpy as np
import jax
import jax.numpy as jnp
from jax.experimental import pallas as pl
from jax.experimental.pallas import tpu as pltpu


# ----------------------------------------------------------------------------
# Static gaussian-blur machinery (host-side numpy, baked into the call)
# ----------------------------------------------------------------------------
def _gaussian_kernel1d(kernel_size: int, sigma: float) -> np.ndarray:
    """Matches torchvision _get_gaussian_kernel1d (normalized gaussian)."""
    ksize_half = (kernel_size - 1) * 0.5
    xs = np.linspace(-ksize_half, ksize_half, kernel_size, dtype=np.float64)
    pdf = np.exp(-0.5 * (xs / sigma) ** 2)
    return pdf / pdf.sum()


def _band_matrix(n: int, k1d: np.ndarray) -> np.ndarray:
    """M (n x n) such that M @ v == 1-D gaussian blur of v with reflect pad."""
    pad = len(k1d) // 2
    m = np.zeros((n, n), dtype=np.float64)
    for i in range(n):
        for d, w in enumerate(k1d):
            j = i + d - pad
            if j < 0:
                j = -j                       # 'reflect' (edge not repeated)
            elif j >= n:
                j = 2 * (n - 1) - j
            m[i, j] += w
    return m


# ----------------------------------------------------------------------------
# Kernel: blur = A @ x @ B on the MXU, then high-pass + clamp on the VPU.
# ----------------------------------------------------------------------------
def _sobel_kernel(a_ref, b_ref, x_ref, o_ref):
    x = x_ref[...].astype(jnp.float32)                         # (TB*H, G*W)
    # Horizontal 5-tap blur: lane-contracting matmul with block-diagonal B
    # (reflect boundary + packed-image boundaries folded into B).
    t = jnp.dot(x, b_ref[...], preferred_element_type=jnp.float32)
    # Vertical 5-tap blur: sublane-contracting matmul with block-diagonal A.
    blur = jnp.dot(a_ref[...], t, preferred_element_type=jnp.float32)
    # High-pass + clamp_min(0).
    o_ref[...] = jnp.maximum(x - blur, 0.0).astype(o_ref.dtype)


def _choose_packing(nc: int, h: int, w: int):
    """Pick (G, NG, TB): lane packing, #packed groups, groups per grid step."""
    # Lane packing: G images side-by-side along W so the packed width is a
    # multiple of 128 lanes (unmasked stores) whenever possible, capped at 512.
    g_dense, g_widest = 1, 1
    for g in range(1, nc + 1):
        if nc % g or g * w > 512:
            continue
        g_widest = g
        if (g * w) % 128 == 0:
            g_dense = g
    G = g_dense if (g_dense * w) % 128 == 0 else g_widest
    NG = nc // G

    # Sublane batching: TB groups per grid step.  Target <=1 MiB f32 blocks and
    # <=256 rows (keeps A = kron(I_TB, A_H) small so the op stays HBM-bound),
    # while keeping >=2 grid steps when possible (v7x: 2 TensorCores).
    TB = NG                                    # always-legal single-block fallback
    for tb in range(1, NG + 1):
        if NG % tb:
            continue
        if (tb * h) % 8 and tb != NG:          # respect the (8,128) constraint
            continue
        if tb * h > 256 or tb * h * G * w * 4 > (1 << 20):
            continue
        if NG >= 2 and NG // tb < 2:
            continue
        TB = tb
    return G, NG, TB


def sobel_forward(x: jax.Array, kernel_size: int = 5, sigma: float = 5.0) -> jax.Array:
    """Pallas TPU implementation of Sobel.forward for NCHW input."""
    assert x.ndim == 4, "expected NCHW"
    N, C, H, W = x.shape
    pad = kernel_size // 2
    assert H > pad and W > pad, "reflect padding requires H, W > pad"
    # TODO(synk): for H or W > ~256-512, switch to a halo-tiled separable VPU
    # path; the banded-matmul FLOPs would exceed the memory-bound budget there.
    assert H <= 256 and W <= 512, "band-matmul path is sized for small images"

    NC = N * C
    G, NG, TB = _choose_packing(NC, H, W)
    GW = G * W                                  # lanes per block (128 for 16x16)
    R = TB * H                                  # sublane rows per block

    # Static banded blur matrices with the reflect boundary folded in.
    k1d = _gaussian_kernel1d(kernel_size, sigma)
    a_big = jnp.asarray(np.kron(np.eye(TB), _band_matrix(H, k1d)), jnp.float32)
    b_big = jnp.asarray(np.kron(np.eye(G), _band_matrix(W, k1d).T), jnp.float32)

    # Lane-dense packing: (N,C,H,W) -> (NG*H, G*W); image nc = ng*G + g lives
    # in rows [ng*H, ng*H+H) and lanes [g*W, g*W+W).
    xg = x.reshape(NG, G, H, W).transpose(0, 2, 1, 3).reshape(NG * H, GW)

    n_steps = NG // TB
    block_bytes = R * GW * 4
    const_bytes = (R * R + GW * GW) * 4
    vmem_limit = int(min(max(8 * block_bytes + 2 * const_bytes, 8 << 20), 40 << 20))
    cost = pl.CostEstimate(
        flops=2 * n_steps * R * GW * (GW + R),
        transcendentals=0,
        bytes_accessed=2 * int(x.size) * int(x.dtype.itemsize) + const_bytes)

    out2d = pl.pallas_call(
        _sobel_kernel,
        out_shape=jax.ShapeDtypeStruct((NG * H, GW), x.dtype),
        grid=(n_steps,),
        in_specs=[
            pl.BlockSpec((R, R), lambda i: (0, 0)),       # A (resident, loaded once)
            pl.BlockSpec((GW, GW), lambda i: (0, 0)),     # B (resident, loaded once)
            pl.BlockSpec((R, GW), lambda i: (i, 0)),      # x row-blocks
        ],
        out_specs=pl.BlockSpec((R, GW), lambda i: (i, 0)),
        compiler_params=pltpu.CompilerParams(
            dimension_semantics=("parallel",),
            vmem_limit_bytes=vmem_limit),
        cost_estimate=cost,
    )(a_big, b_big, xg)

    return out2d.reshape(NG, H, G, W).transpose(0, 2, 1, 3).reshape(N, C, H, W)


def _reference(x, kernel_size=5, sigma=5.0):
    """Pure-JAX reference (25-tap 2D accumulation, reflect pad, clamp)."""
    pad = kernel_size // 2
    k1d = _gaussian_kernel1d(kernel_size, sigma)
    k2d = jnp.asarray(np.outer(k1d, k1d).astype(np.float32))
    xp = jnp.pad(x, ((0, 0), (0, 0), (pad, pad), (pad, pad)), mode="reflect")
    N, C, H, W = x.shape
    acc = jnp.zeros_like(x)
    for di in range(kernel_size):
        for dj in range(kernel_size):
            acc = acc + k2d[di, dj] * xp[:, :, di:di + H, dj:dj + W]
    return jnp.maximum(x - acc, 0.0)


if __name__ == "__main__":
    key = jax.random.PRNGKey(0)
    x = jax.random.normal(key, (2, 4, 16, 16), dtype=jnp.float32)

    out = jax.block_until_ready(sobel_forward(x, kernel_size=5, sigma=5.0))
    ref = jax.block_until_ready(_reference(x, kernel_size=5, sigma=5.0))
    np.testing.assert_allclose(np.asarray(out), np.asarray(ref),
                               rtol=1e-5, atol=1e-5)
    print("KERNEL_OK")
</pallas_src>

<mosaic_0001>
module attributes {stable_mosaic.version = 11 : i64} {
  func.func @_sobel_kernel(%arg0: i32, %arg1: memref<16x16xf32, #tpu.memory_space<vmem>>, %arg2: memref<128x128xf32, #tpu.memory_space<vmem>>, %arg3: memref<16x128xf32, #tpu.memory_space<vmem>>, %arg4: memref<16x128xf32, #tpu.memory_space<vmem>>) attributes {dimension_semantics = [#tpu.dimension_semantics<parallel>], iteration_bounds = array<i64: 1>, scalar_prefetch = 0 : i64, scratch_operands = 0 : i64, tpu.core_type = #tpu.core_type<tc>, window_params = [{pipeline_mode = #tpu.pipeline_mode<synchronous>, transform_indices = @transform_0, window_bounds = array<i64: 16, 16>}, {pipeline_mode = #tpu.pipeline_mode<synchronous>, transform_indices = @transform_1, window_bounds = array<i64: 128, 128>}, {transform_indices = @transform_2, window_bounds = array<i64: 16, 128>}, {transform_indices = @transform_3, window_bounds = array<i64: 16, 128>}]} {
    %c0 = arith.constant 0 : index
    %c0_0 = arith.constant 0 : index
    %0 = vector.load %arg3[%c0, %c0_0] : memref<16x128xf32, #tpu.memory_space<vmem>>, vector<16x128xf32>
    %c0_1 = arith.constant 0 : index
    %c0_2 = arith.constant 0 : index
    %1 = vector.load %arg2[%c0_1, %c0_2] : memref<128x128xf32, #tpu.memory_space<vmem>>, vector<128x128xf32>
    %cst = arith.constant dense<0.000000e+00> : vector<16x128xf32>
    %2 = tpu.matmul %0, %1, %cst {dimension_numbers = #tpu.dot_dimension_numbers<[1], [0], [0], [1], [0, 0, 1, 1], [], []>} : vector<16x128xf32>, vector<128x128xf32>, vector<16x128xf32> -> vector<16x128xf32>
    %c0_3 = arith.constant 0 : index
    %c0_4 = arith.constant 0 : index
    %3 = vector.load %arg1[%c0_3, %c0_4] : memref<16x16xf32, #tpu.memory_space<vmem>>, vector<16x16xf32>
    %cst_5 = arith.constant dense<0.000000e+00> : vector<16x128xf32>
    %4 = tpu.matmul %3, %2, %cst_5 {dimension_numbers = #tpu.dot_dimension_numbers<[1], [0], [0], [1], [0, 0, 1, 1], [], []>} : vector<16x16xf32>, vector<16x128xf32>, vector<16x128xf32> -> vector<16x128xf32>
    %5 = arith.subf %0, %4 : vector<16x128xf32>
    %cst_6 = arith.constant 0.000000e+00 : f32
    %6 = vector.broadcast %cst_6 : f32 to vector<16x128xf32>
    %7 = arith.maximumf %5, %6 : vector<16x128xf32>
    %c0_7 = arith.constant 0 : index
    %c0_8 = arith.constant 0 : index
    %8 = vector.load %arg4[%c0_7, %c0_8] : memref<16x128xf32, #tpu.memory_space<vmem>>, vector<16x128xf32>
    tpu.vector_store %arg4[%c0_7, %c0_8], %7 {strides = array<i32>} : memref<16x128xf32, #tpu.memory_space<vmem>>, vector<16x128xf32>,
    return
  }
  func.func @transform_0(%arg0: i32) -> (i32, i32) {
    %c0_i32 = arith.constant 0 : i32
    %c0_i32_0 = arith.constant 0 : i32
    %c0_i32_1 = arith.constant 0 : i32
    return %c0_i32, %c0_i32_0 : i32, i32
  }
  func.func @transform_1(%arg0: i32) -> (i32, i32) {
    %c0_i32 = arith.constant 0 : i32
    %c0_i32_0 = arith.constant 0 : i32
    %c0_i32_1 = arith.constant 0 : i32
    return %c0_i32, %c0_i32_0 : i32, i32
  }
  func.func @transform_2(%arg0: i32) -> (i32, i32) {
    %c0_i32 = arith.constant 0 : i32
    %c0_i32_0 = arith.constant 0 : i32
    return %arg0, %c0_i32 : i32, i32
  }
  func.func @transform_3(%arg0: i32) -> (i32, i32) {
    %c0_i32 = arith.constant 0 : i32
    %c0_i32_0 = arith.constant 0 : i32
    return %arg0, %c0_i32 : i32, i32
  }
}

</mosaic_0001>

<bundles_post_ra>
// kernel: tpu_custom_call.1
= control target key start
LH: loop header
LB: loop body
LE: loop exit
PB: predicated region body
PF: predicated region fallthrough
CT: control target
= control target key end

     0   :  { %8 = vsyncpa [#allocation3], 0  ;;  %s552_s0 = inlined_call_operand.hbm [shape: f32[16,16], index: 0, kind: input, shape index: {}]   ;;  %s553_s1 = inlined_call_operand.hbm [shape: f32[128,128], index: 1, kind: input, shape index: {}]   ;;  %s554_s2 = inlined_call_operand.hbm [shape: f32[16,128], index: 2, kind: input, shape index: {}]   ;;  %s555_s3 = inlined_call_operand.hbm [shape: f32[16,128], index: 3, kind: output, shape index: {}]  }
   0x1   :  { %9 = vsyncpa [#allocation6], 0 }
   0x2   :  { %10 = vsyncpa [#allocation4], 0  ;;  %s459_s12 = smov [#allocation5]   ;;  %s460_s14 = smov [#allocation2]  }
   0x3   :  { %s28_s13 = sshll.u32 %s459_s12, 4  ;;  %s16_s15 = sshll.u32 %s460_s14, 4  ;;  %s29_s13 = int_to_ptr.vmem [resolvable:$true] %s28_s13  ;;  %s485_s15 = int_to_ptr.vmem [resolvable:$true] %s16_s15 }
   0x4   :  { %s365_s18 = scalar_lea.hbm %s553_s1, 2048 }
   0x5   :  { %p366_p0 = scmp.ne.s32.totalorder %s553_s1, %s365_s18  ;;  %p369_p1 = scmp.lt.u32.totalorder %s365_s18, %s553_s1 }
   0x7   :  { %p371_p2 = pnand %p369_p1, %p366_p0 }
   0x9   :  { %374 = shalt.err (!%p371_p2)
}
   0xa   :  { %s375_s23 = scalar_lea.vmem %s29_s13, 2048  ;;  %p380_p4 = scmp.lt.s32.totalorder %s29_s13, %s29_s13 }
   0xb   :  { %p376_p3 = scmp.ne.s32.totalorder %s29_s13, %s375_s23  ;;  %p381_p5 = scmp.lt.s32.totalorder %s375_s23, %s375_s23 }
   0xd   :  { %p382_p6 = por %p381_p5, %p380_p4 }
   0xf   :  { %p383_p7 = pnand %p382_p6, %p376_p3 }
  0x11   :  { %386 = shalt.err (!%p383_p7)
}
  0x12   :  { %s461_s24 = smov 128   ;;  %s462_s25 = smov 8  }
  0x13   :  { %34 = dma.hbm_to_vmem [thread:$0]  %s553_s1, 2048, %s29_s13, [#allocation6], %s461_s24, %s461_s24, %s462_s25  }
  0x14   :  { %s387_s30 = scalar_lea.hbm %s552_s0, 256 }
  0x15   :  { %p388_p8 = scmp.ne.s32.totalorder %s552_s0, %s387_s30  ;;  %p391_p9 = scmp.lt.u32.totalorder %s387_s30, %s552_s0 }
  0x17   :  { %p393_p10 = pnand %p391_p9, %p388_p8 }
  0x19   :  { %396 = shalt.err (!%p393_p10)
}
  0x1a   :  { %s397_s8 = scalar_lea.vmem %s485_s15, 256  ;;  %p402_p12 = scmp.lt.s32.totalorder %s485_s15, %s485_s15 }
  0x1b   :  { %p398_p11 = scmp.ne.s32.totalorder %s485_s15, %s397_s8  ;;  %p403_p13 = scmp.lt.s32.totalorder %s397_s8, %s397_s8 }
  0x1d   :  { %p404_p0 = por %p403_p13, %p402_p12 }
  0x1f   :  { %p405_p1 = pnand %p404_p0, %p398_p11 }
  0x21   :  { %408 = shalt.err (!%p405_p1)
}
  0x22   :  { %22 = dma.hbm_to_vmem [thread:$0]  %s552_s0, 256, %s485_s15, [#allocation3], %s461_s24, %s461_s24, %s462_s25  }
  0x23   :  { %s463_s10 = smov [#allocation7]   ;;  %s409_s14 = scalar_lea.hbm %s554_s2, 256 }
  0x24   :  { %s40_s11 = sshll.u32 %s463_s10, 4  ;;  %p410_p2 = scmp.ne.s32.totalorder %s554_s2, %s409_s14  ;;  %s41_s11 = int_to_ptr.vmem [resolvable:$true] %s40_s11 }
  0x25   :  { %p413_p3 = scmp.lt.u32.totalorder %s409_s14, %s554_s2 }
  0x27   :  { %p415_p4 = pnand %p413_p3, %p410_p2 }
  0x29   :  { %418 = shalt.err (!%p415_p4)
}
  0x2a   :  { %s419_s20 = scalar_lea.vmem %s41_s11, 256  ;;  %p424_p6 = scmp.lt.s32.totalorder %s41_s11, %s41_s11 }
  0x2b   :  { %p420_p5 = scmp.ne.s32.totalorder %s41_s11, %s419_s20  ;;  %p425_p7 = scmp.lt.s32.totalorder %s419_s20, %s419_s20 }
  0x2d   :  { %p426_p8 = por %p425_p7, %p424_p6 }
  0x2f   :  { %p427_p9 = pnand %p426_p8, %p420_p5 }
  0x31   :  { %430 = shalt.err (!%p427_p9)
}
  0x32   :  { %46 = dma.hbm_to_vmem [thread:$0]  %s554_s2, 256, %s41_s11, [#allocation6], %s461_s24, %s461_s24, %s462_s25  }
  0x33   :  { %453 = dma.done.wait [#allocation3], 256  }
  0x34   :  { %454 = vsyncadd [#allocation3], 4294967040 }
  0x35   :  { %455 = dma.done.wait [#allocation6], 2304  }
  0x36   :  { %456 = vsyncadd [#allocation6], 4294964992  ;;  %v58_v0 = vld [vmem:[#allocation5] sm:$0xff]  ;;  %v59_v1 = vld [vmem:[#allocation5 + $0x8] sm:$0xff]  ;;  %vm151_vm0 = vcmask 130048   ;;  %s464_s2 = smov [#allocation8]  }
  0x37   :  { %v60_v2 = vld [vmem:[#allocation5 + $0x10] sm:$0xff]  ;;  %v323_v3 = vpack.c.bf16 %v59_v1, %v58_v0  ;;  %v61_v4 = vld [vmem:[#allocation5 + $0x18] sm:$0xff]  ;;  %v62_v6 = vld [vmem:[#allocation5 + $0x20] sm:$0xff]  ;;  %s244_s21 = sshll.u32 %s464_s2, 4  ;;  %s245_s21 = int_to_ptr.vmem [resolvable:$true] %s244_s21 }
  0x38   :  { %v327_v5 = vpack.c.bf16 %v61_v4, %v60_v2  ;;  %v63_v7 = vld [vmem:[#allocation5 + $0x28] sm:$0xff]  ;;  %v56_v9 = vld [vmem:[#allocation7] sm:$0xff]  ;;  %v64_v10 = vld [vmem:[#allocation5 + $0x30] sm:$0xff]  ;;  %s431_s22 = scalar_lea.vmem %s245_s21, 256  ;;  %p436_p11 = scmp.lt.s32.totalorder %s245_s21, %s245_s21 }
  0x39   :  { %324 = vmatprep.subr.bf16.mxu0 %v323_v3  ;;  %v331_v8 = vpack.c.bf16 %v63_v7, %v62_v6  ;;  %v65_v11 = vld [vmem:[#allocation5 + $0x38] sm:$0xff]  ;;  %313 = vmatprep.mubr.f32.mxu0 %v56_v9  ;;  %v66_v13 = vld [vmem:[#allocation5 + $0x40] sm:$0xff]  ;;  %v67_v14 = vld [vmem:[#allocation5 + $0x48] sm:$0xff]  ;;  %p432_p10 = scmp.ne.s32.totalorder %s245_s21, %s431_s22  ;;  %p437_p12 = scmp.lt.s32.totalorder %s431_s22, %s431_s22 }
  0x3a   :  { %326 = vmatpush3.bf16.msra.mxu0 %v323_v3  ;;  %v335_v12 = vpack.c.bf16 %v65_v11, %v64_v10  ;;  %v339_v15 = vpack.c.bf16 %v67_v14, %v66_v13  ;;  %v68_v16 = vld [vmem:[#allocation5 + $0x50] sm:$0xff]  ;;  %v69_v17 = vld [vmem:[#allocation5 + $0x58] sm:$0xff]  ;;  %v70_v19 = vld [vmem:[#allocation5 + $0x60] sm:$0xff] }
  0x3b   :  { %328 = vmatprep.subr.bf16.mxu0 %v327_v5  ;;  %v343_v18 = vpack.c.bf16 %v69_v17, %v68_v16  ;;  %v71_v20 = vld [vmem:[#allocation5 + $0x68] sm:$0xff]  ;;  %v72_v22 = vld [vmem:[#allocation5 + $0x70] sm:$0xff]  ;;  %v73_v23 = vld [vmem:[#allocation5 + $0x78] sm:$0xff]  ;;  %p438_p13 = por %p437_p12, %p436_p11 }
  0x3c   :  { %v347_v21 = vpack.c.bf16 %v71_v20, %v70_v19  ;;  %v351_v24 = vpack.c.bf16 %v73_v23, %v72_v22  ;;  %v57_v25 = vld [vmem:[#allocation7 + $0x8] sm:$0xff]  ;;  %v149_v26 = vld [vmem:[#allocation2] sm:$0xff]  ;;  %v150_v30 = vld [vmem:[#allocation2 + $0x8] sm:$0xff] }
  0x3d   :  { %320 = vmatprep.mubr.msk.f32.mxu1 %vm151_vm0, %v149_v26  ;;  %p439_p0 = pnand %p438_p13, %p432_p10 }
  0x3e   :  { %330 = vmatpush3.bf16.msra.mxu0 %v327_v5 }
  0x3f   :  { %332 = vmatprep.subr.bf16.mxu0 %v331_v8 }
  0x42   :  { %334 = vmatpush3.bf16.msra.mxu0 %v331_v8 }
  0x43   :  { %336 = vmatprep.subr.bf16.mxu0 %v335_v12 }
  0x46   :  { %338 = vmatpush3.bf16.msra.mxu0 %v335_v12 }
  0x47   :  { %340 = vmatprep.subr.bf16.mxu0 %v339_v15 }
  0x4a   :  { %342 = vmatpush3.bf16.msra.mxu0 %v339_v15 }
  0x4b   :  { %344 = vmatprep.subr.bf16.mxu0 %v343_v18 }
  0x4e   :  { %346 = vmatpush3.bf16.msra.mxu0 %v343_v18 }
  0x4f   :  { %348 = vmatprep.subr.bf16.mxu0 %v347_v21 }
  0x52   :  { %350 = vmatpush3.bf16.msra.mxu0 %v347_v21 }
  0x53   :  { %352 = vmatprep.subr.bf16.mxu0 %v351_v24 }
  0x56   :  { %354 = vmatpush3.bf16.msra.mxu0 %v351_v24 }
  0x59   :  { %314 = vmatmul.mubr.f32.vlgmr.msra.gmra.mrb[0].mxu0 %v57_v25 }
 0x12c   :  { %v315_v27 = vpop.f32.mrb[0].mxu0 }
 0x12d   :  { %v140_v28 = vpop.f32.mrb[1].mxu0 }
 0x12e   :  { %v355_v29 = vpack.c.bf16 %v315_v27, %v140_v28 }
 0x130   :  { %356 = vmatprep.subr.bf16.mxu1 %v355_v29 }
 0x131   :  { %358 = vmatpush3.bf16.msra.mxu1 %v355_v29 }
 0x134   :  { %321 = vmatmul.mubr.msk.f32.vlgmr.msra.gmra.mrb[0].mxu1 %vm151_vm0, %v150_v30 }
 0x207   :  { %v322_v31 = vpop.f32.mrb[0].mxu1 }
 0x208   :  { %v234_v32 = vsub.f32 %v57_v25, %v322_v31  ;;  %v224_v33 = vpop.f32.mrb[1].mxu1 }
 0x209   :  { %v233_v34 = vsub.f32 %v56_v9, %v224_v33 }
 0x20a   :  { %v236_v35 = vmax.f32 %v234_v32, 0.0 }
 0x20b   :  { %v235_v36 = vmax.f32 %v233_v34, 0.0 }
 0x20c   :  { %238 = vst [vmem:[#allocation8 + $0x8] sm:$0xff] %v236_v35 }
 0x20d   :  { %237 = vst [vmem:[#allocation8] sm:$0xff] %v235_v36 }
 0x20e   :  { %442 = shalt.err (!%p439_p0)
}
 0x20f   :  { %s443_s27 = scalar_lea.hbm %s555_s3, 256 }
 0x210   :  { %p444_p1 = scmp.ne.s32.totalorder %s555_s3, %s443_s27  ;;  %p447_p2 = scmp.lt.u32.totalorder %s443_s27, %s555_s3 }
 0x212   :  { %p449_p3 = pnand %p447_p2, %p444_p1 }
 0x214   :  { %452 = shalt.err (!%p449_p3)
}
 0x215   :  { %250 = dma.vmem_to_hbm [thread:$0]  %s245_s21, 256, %s555_s3, [#allocation4], %s461_s24, %s461_s24, %s462_s25  }
 0x216   :  { %457 = dma.done.wait [#allocation4], 256  }
 0x217   :  { %458 = vsyncadd [#allocation4], 4294967040 }
 0x218   :  { %254 = vsyncpa [#allocation3], 1 }
 0x219   :  { %255 = vsyncpa [#allocation6], 1 }
 0x21a   :  { %256 = vsyncpa [#allocation4], 1 }

</bundles_post_ra>
